<compile_context>
chip_gen: v5e
topology: v5e:2x2
jax: 0.10.0
libtpu: 0.0.40
codegen_flags: <defaults>
</compile_context>

<pallas_src>
from functools import partial

import jax
import jax.numpy as jnp
from jax.experimental import pallas as pl
from jax.experimental.pallas import tpu as pltpu

LANE = 128      # TPU lane width
SUBLANE = 8     # f32 sublane count


def policy_net_kernel(x_ref, w1_ref, w23_ref, b_ref, o_ref, *, action_dim):
    # x_ref:   (block, state_dim) matmul-dtype input rows (batch-padded only)
    # w1_ref:  (state_dim, 128)   matmul-dtype layer-1 weight (lane-padded)
    # w23_ref: (2, 128, 128)      matmul-dtype packed [W2; W3] (lane-padded)
    # b_ref:   (3, 1, 128)        f32 packed [b1; b2; b3] (zero-padded)
    # o_ref:   (block, 128)       f32 log-probs; lanes >= action_dim hold -inf
    mm_dtype = w1_ref.dtype

    # Layer 1: (block, state_dim) @ (state_dim, 128), f32 accumulate.
    h = jnp.dot(x_ref[...], w1_ref[...],
                preferred_element_type=jnp.float32) + b_ref[0]
    h = jnp.maximum(h, 0.0)                       # f32 epilogue

    # Layer 2: (block, 128) @ (128, 128).
    h = jnp.dot(h.astype(mm_dtype), w23_ref[0],
                preferred_element_type=jnp.float32) + b_ref[1]
    h = jnp.maximum(h, 0.0)

    # Layer 3: (block, 128) @ (128, 128) -> logits (only first action_dim real).
    logits = jnp.dot(h.astype(mm_dtype), w23_ref[1],
                     preferred_element_type=jnp.float32) + b_ref[2]

    # In-place lane mask instead of a narrow slice: padded lanes -> -inf, so
    # exp(-inf)=0 keeps the LSE exact while everything stays a full 128-lane
    # vreg slab straight through to a lane-dense store.
    lane_id = jax.lax.broadcasted_iota(jnp.int32, logits.shape, 1)
    logits = jnp.where(lane_id < action_dim, logits, -jnp.inf)

    # Numerically stable log_softmax along the last axis, in f32.
    m = jnp.max(logits, axis=-1, keepdims=True)
    z = logits - m
    lse = jnp.log(jnp.sum(jnp.exp(z), axis=-1, keepdims=True))
    o_ref[...] = (z - lse).astype(o_ref.dtype)


def pack_params(params, state_dim, hidden_dim, action_dim, *,
                matmul_dtype=jnp.bfloat16):
    """Pack (w1,b1,w2,b2,w3,b3) into resident lane-padded buffers.

    Weights are cast to the matmul dtype ONCE here (not per grid step in the
    kernel); biases stay f32 to match the f32 accumulation path.
    """
    w1, b1, w2, b2, w3, b3 = params
    W1 = jnp.zeros((state_dim, LANE), jnp.float32)
    W1 = W1.at[:, :hidden_dim].set(w1).astype(matmul_dtype)

    W23 = jnp.zeros((2, LANE, LANE), jnp.float32)
    W23 = W23.at[0, :hidden_dim, :hidden_dim].set(w2)
    W23 = W23.at[1, :hidden_dim, :action_dim].set(w3)
    W23 = W23.astype(matmul_dtype)

    B = jnp.zeros((3, 1, LANE), jnp.float32)
    B = B.at[0, 0, :hidden_dim].set(b1.reshape(-1))
    B = B.at[1, 0, :hidden_dim].set(b2.reshape(-1))
    B = B.at[2, 0, :action_dim].set(b3.reshape(-1))
    return W1, W23, B


def policy_network_forward(x, packed_params, *, action_dim, block_b=2048):
    """x: (B, state_dim) f32 -> (B, action_dim) f32 log-probabilities."""
    W1, W23, B = packed_params
    batch, feat = x.shape
    mm_dtype = W1.dtype
    itemsize = jnp.dtype(mm_dtype).itemsize

    # Pad batch only to a sublane multiple (8), then to a multiple of the row
    # block (block == full padded batch for small RL-style batches).
    bp = max(SUBLANE, ((batch + SUBLANE - 1) // SUBLANE) * SUBLANE)
    block = min(block_b, bp)
    bp = ((bp + block - 1) // block) * block
    grid = (bp // block,)

    # Input stays at its true feature width; only batch rows are padded.
    xp = jnp.zeros((bp, feat), mm_dtype).at[:batch, :].set(x.astype(mm_dtype))

    flops = 2 * bp * (feat * LANE + 2 * LANE * LANE)
    bytes_accessed = (xp.size * itemsize            # streamed activations
                      + W1.size * itemsize + W23.size * itemsize  # resident (once)
                      + B.size * 4                  # resident (once)
                      + bp * LANE * 4)              # lane-dense f32 output

    out = pl.pallas_call(
        partial(policy_net_kernel, action_dim=action_dim),
        out_shape=jax.ShapeDtypeStruct((bp, LANE), jnp.float32),
        grid=grid,
        in_specs=[
            # Activations: block_b rows per grid step, true feature width.
            pl.BlockSpec((block, feat), lambda i: (i, 0)),
            # Packed params: constant index_map -> resident in VMEM across grid.
            pl.BlockSpec((feat, LANE), lambda i: (0, 0)),
            pl.BlockSpec((2, LANE, LANE), lambda i: (0, 0, 0)),
            pl.BlockSpec((3, 1, LANE), lambda i: (0, 0, 0)),
        ],
        # Lane-dense 128-wide output block -> unmasked full vector stores.
        out_specs=pl.BlockSpec((block, LANE), lambda i: (i, 0)),
        compiler_params=pltpu.CompilerParams(
            dimension_semantics=("parallel",)),     # shards batch across TCs (v7x)
        cost_estimate=pl.CostEstimate(
            flops=int(flops),
            transcendentals=int(bp * action_dim),   # exp over real lanes only
            bytes_accessed=int(bytes_accessed)),
    )(xp, W1, W23, B)

    # Drop padded batch rows and padded (-inf) lanes.
    return out[:batch, :action_dim]


def init_params(key, state_dim, hidden_dim, action_dim):
    """Deterministic PyTorch-style uniform(-1/sqrt(fan_in), 1/sqrt(fan_in)) init."""
    keys = jax.random.split(key, 6)

    def linear(kw, kb, fan_in, fan_out):
        bound = 1.0 / jnp.sqrt(fan_in)
        w = jax.random.uniform(kw, (fan_in, fan_out), jnp.float32, -bound, bound)
        b = jax.random.uniform(kb, (1, fan_out), jnp.float32, -bound, bound)
        return w, b

    w1, b1 = linear(keys[0], keys[1], state_dim, hidden_dim)
    w2, b2 = linear(keys[2], keys[3], hidden_dim, hidden_dim)
    w3, b3 = linear(keys[4], keys[5], hidden_dim, action_dim)
    return (w1, b1, w2, b2, w3, b3)


def _reference(x, params):
    w1, b1, w2, b2, w3, b3 = params
    h = jnp.maximum(x @ w1 + b1, 0.0)
    h = jnp.maximum(h @ w2 + b2, 0.0)
    return jax.nn.log_softmax(h @ w3 + b3, axis=-1)


if __name__ == "__main__":
    # CartPole-like sizes: state_dim=4, hidden_dim=32, action_dim=2, batch=2.
    state_dim, hidden_dim, action_dim = 4, 32, 2
    batch = 2

    key = jax.random.PRNGKey(0)
    k_params, k_x, k_x2 = jax.random.split(key, 3)
    params = init_params(k_params, state_dim, hidden_dim, action_dim)
    x = jax.random.normal(k_x, (batch, state_dim), jnp.float32)

    # 1) Default bf16-MXU path (f32 accumulation): fast path, loose tolerance.
    packed_bf16 = pack_params(params, state_dim, hidden_dim, action_dim,
                              matmul_dtype=jnp.bfloat16)
    logits = policy_network_forward(x, packed_bf16, action_dim=action_dim)
    jax.block_until_ready(logits)
    ref = _reference(x, params)
    assert logits.shape == (batch, action_dim)
    assert jnp.all(jnp.isfinite(logits))
    assert jnp.allclose(logits, ref, atol=5e-2, rtol=5e-2), "bf16 path mismatch"

    # 2) f32 path: bit-for-bit-level check of the kernel math.
    packed_f32 = pack_params(params, state_dim, hidden_dim, action_dim,
                             matmul_dtype=jnp.float32)
    logits_f32 = policy_network_forward(x, packed_f32, action_dim=action_dim)
    jax.block_until_ready(logits_f32)
    assert jnp.allclose(logits_f32, ref, atol=1e-5), "f32 path mismatch"

    # 3) Multi-block grid path (grid > 1, padded batch rows) stays correct.
    x_big = jax.random.normal(k_x2, (37, state_dim), jnp.float32)
    logits_big = policy_network_forward(x_big, packed_f32,
                                        action_dim=action_dim, block_b=16)
    jax.block_until_ready(logits_big)
    ref_big = _reference(x_big, params)
    assert logits_big.shape == (37, action_dim)
    assert jnp.allclose(logits_big, ref_big, atol=1e-5), "multi-block mismatch"

    print("KERNEL_OK")
</pallas_src>

<mosaic_0001>
module attributes {stable_mosaic.version = 11 : i64} {
  func.func @policy_net_kernel(%arg0: i32, %arg1: memref<8x4xbf16, #tpu.memory_space<vmem>>, %arg2: memref<4x128xbf16, #tpu.memory_space<vmem>>, %arg3: memref<2x128x128xbf16, #tpu.memory_space<vmem>>, %arg4: memref<3x1x128xf32, #tpu.memory_space<vmem>>, %arg5: memref<8x128xf32, #tpu.memory_space<vmem>>) attributes {dimension_semantics = [#tpu.dimension_semantics<parallel>], iteration_bounds = array<i64: 1>, scalar_prefetch = 0 : i64, scratch_operands = 0 : i64, tpu.core_type = #tpu.core_type<tc>, window_params = [{transform_indices = @transform_0, window_bounds = array<i64: 8, 4>}, {pipeline_mode = #tpu.pipeline_mode<synchronous>, transform_indices = @transform_1, window_bounds = array<i64: 4, 128>}, {pipeline_mode = #tpu.pipeline_mode<synchronous>, transform_indices = @transform_2, window_bounds = array<i64: 2, 128, 128>}, {pipeline_mode = #tpu.pipeline_mode<synchronous>, transform_indices = @transform_3, window_bounds = array<i64: 3, 1, 128>}, {transform_indices = @transform_4, window_bounds = array<i64: 8, 128>}]} {
    %c0 = arith.constant 0 : index
    %c0_0 = arith.constant 0 : index
    %0 = vector.load %arg1[%c0, %c0_0] : memref<8x4xbf16, #tpu.memory_space<vmem>>, vector<8x4xbf16>
    %c0_1 = arith.constant 0 : index
    %c0_2 = arith.constant 0 : index
    %1 = vector.load %arg2[%c0_1, %c0_2] : memref<4x128xbf16, #tpu.memory_space<vmem>>, vector<4x128xbf16>
    %cst = arith.constant dense<0.000000e+00> : vector<8x128xf32>
    %2 = tpu.matmul %0, %1, %cst {dimension_numbers = #tpu.dot_dimension_numbers<[1], [0], [0], [1], [0, 0, 1, 1], [], []>} : vector<8x4xbf16>, vector<4x128xbf16>, vector<8x128xf32> -> vector<8x128xf32>
    %c0_3 = arith.constant 0 : index
    %c0_4 = arith.constant 0 : index
    %c0_5 = arith.constant 0 : index
    %3 = vector.load %arg4[%c0_3, %c0_4, %c0_5] : memref<3x1x128xf32, #tpu.memory_space<vmem>>, vector<1x1x128xf32>
    %4 = vector.shape_cast %3 : vector<1x1x128xf32> to vector<1x128xf32>
    %5 = vector.broadcast %4 : vector<1x128xf32> to vector<8x128xf32>
    %6 = arith.addf %2, %5 : vector<8x128xf32>
    %cst_6 = arith.constant 0.000000e+00 : f32
    %7 = vector.broadcast %cst_6 : f32 to vector<8x128xf32>
    %8 = arith.maximumf %6, %7 : vector<8x128xf32>
    %9 = arith.truncf %8 : vector<8x128xf32> to vector<8x128xbf16>
    %c0_7 = arith.constant 0 : index
    %c0_8 = arith.constant 0 : index
    %c0_9 = arith.constant 0 : index
    %10 = vector.load %arg3[%c0_7, %c0_8, %c0_9] : memref<2x128x128xbf16, #tpu.memory_space<vmem>>, vector<1x128x128xbf16>
    %11 = vector.shape_cast %10 : vector<1x128x128xbf16> to vector<128x128xbf16>
    %cst_10 = arith.constant dense<0.000000e+00> : vector<8x128xf32>
    %12 = tpu.matmul %9, %11, %cst_10 {dimension_numbers = #tpu.dot_dimension_numbers<[1], [0], [0], [1], [0, 0, 1, 1], [], []>} : vector<8x128xbf16>, vector<128x128xbf16>, vector<8x128xf32> -> vector<8x128xf32>
    %c1 = arith.constant 1 : index
    %c0_11 = arith.constant 0 : index
    %c0_12 = arith.constant 0 : index
    %13 = vector.load %arg4[%c1, %c0_11, %c0_12] : memref<3x1x128xf32, #tpu.memory_space<vmem>>, vector<1x1x128xf32>
    %14 = vector.shape_cast %13 : vector<1x1x128xf32> to vector<1x128xf32>
    %15 = vector.broadcast %14 : vector<1x128xf32> to vector<8x128xf32>
    %16 = arith.addf %12, %15 : vector<8x128xf32>
    %cst_13 = arith.constant 0.000000e+00 : f32
    %17 = vector.broadcast %cst_13 : f32 to vector<8x128xf32>
    %18 = arith.maximumf %16, %17 : vector<8x128xf32>
    %19 = arith.truncf %18 : vector<8x128xf32> to vector<8x128xbf16>
    %c1_14 = arith.constant 1 : index
    %c0_15 = arith.constant 0 : index
    %c0_16 = arith.constant 0 : index
    %20 = vector.load %arg3[%c1_14, %c0_15, %c0_16] : memref<2x128x128xbf16, #tpu.memory_space<vmem>>, vector<1x128x128xbf16>
    %21 = vector.shape_cast %20 : vector<1x128x128xbf16> to vector<128x128xbf16>
    %cst_17 = arith.constant dense<0.000000e+00> : vector<8x128xf32>
    %22 = tpu.matmul %19, %21, %cst_17 {dimension_numbers = #tpu.dot_dimension_numbers<[1], [0], [0], [1], [0, 0, 1, 1], [], []>} : vector<8x128xbf16>, vector<128x128xbf16>, vector<8x128xf32> -> vector<8x128xf32>
    %c2 = arith.constant 2 : index
    %c0_18 = arith.constant 0 : index
    %c0_19 = arith.constant 0 : index
    %23 = vector.load %arg4[%c2, %c0_18, %c0_19] : memref<3x1x128xf32, #tpu.memory_space<vmem>>, vector<1x1x128xf32>
    %24 = vector.shape_cast %23 : vector<1x1x128xf32> to vector<1x128xf32>
    %25 = vector.broadcast %24 : vector<1x128xf32> to vector<8x128xf32>
    %26 = arith.addf %22, %25 : vector<8x128xf32>
    %27 = tpu.iota {dimensions = array<i32: 1>} : vector<8x128xi32>
    %c2_i32 = arith.constant 2 : i32
    %28 = vector.broadcast %c2_i32 : i32 to vector<8x128xi32>
    %29 = arith.cmpi slt, %27, %28 : vector<8x128xi32>
    %cst_20 = arith.constant 0xFF800000 : f32
    %30 = vector.broadcast %cst_20 : f32 to vector<8x128xf32>
    %31 = arith.select %29, %26, %30 : vector<8x128xi1>, vector<8x128xf32>
    %cst_21 = arith.constant dense<0xFF800000> : vector<8xf32>
    %32 = vector.multi_reduction <maximumf>, %31, %cst_21 [1] : vector<8x128xf32> to vector<8xf32>
    %33 = vector.shape_cast %32 : vector<8xf32> to vector<8x1xf32>
    %34 = vector.broadcast %33 : vector<8x1xf32> to vector<8x128xf32>
    %35 = arith.subf %31, %34 : vector<8x128xf32>
    %36 = math.exp %35 : vector<8x128xf32>
    %cst_22 = arith.constant dense<0.000000e+00> : vector<8xf32>
    %37 = vector.multi_reduction <add>, %36, %cst_22 [1] : vector<8x128xf32> to vector<8xf32>
    %38 = vector.shape_cast %37 : vector<8xf32> to vector<8x1xf32>
    %39 = math.log %38 : vector<8x1xf32>
    %40 = vector.broadcast %39 : vector<8x1xf32> to vector<8x128xf32>
    %41 = arith.subf %35, %40 : vector<8x128xf32>
    %c0_23 = arith.constant 0 : index
    %c0_24 = arith.constant 0 : index
    %42 = vector.load %arg5[%c0_23, %c0_24] : memref<8x128xf32, #tpu.memory_space<vmem>>, vector<8x128xf32>
    tpu.vector_store %arg5[%c0_23, %c0_24], %41 {strides = array<i32>} : memref<8x128xf32, #tpu.memory_space<vmem>>, vector<8x128xf32>,
    return
  }
  func.func @transform_0(%arg0: i32) -> (i32, i32) {
    %c0_i32 = arith.constant 0 : i32
    %c0_i32_0 = arith.constant 0 : i32
    return %arg0, %c0_i32 : i32, i32
  }
  func.func @transform_1(%arg0: i32) -> (i32, i32) {
    %c0_i32 = arith.constant 0 : i32
    %c0_i32_0 = arith.constant 0 : i32
    %c0_i32_1 = arith.constant 0 : i32
    return %c0_i32, %c0_i32_0 : i32, i32
  }
  func.func @transform_2(%arg0: i32) -> (i32, i32, i32) {
    %c0_i32 = arith.constant 0 : i32
    %c0_i32_0 = arith.constant 0 : i32
    %c0_i32_1 = arith.constant 0 : i32
    %c0_i32_2 = arith.constant 0 : i32
    return %c0_i32, %c0_i32_0, %c0_i32_1 : i32, i32, i32
  }
  func.func @transform_3(%arg0: i32) -> (i32, i32, i32) {
    %c0_i32 = arith.constant 0 : i32
    %c0_i32_0 = arith.constant 0 : i32
    %c0_i32_1 = arith.constant 0 : i32
    %c0_i32_2 = arith.constant 0 : i32
    return %c0_i32, %c0_i32_0, %c0_i32_1 : i32, i32, i32
  }
  func.func @transform_4(%arg0: i32) -> (i32, i32) {
    %c0_i32 = arith.constant 0 : i32
    %c0_i32_0 = arith.constant 0 : i32
    return %arg0, %c0_i32 : i32, i32
  }
}

</mosaic_0001>

<bundles_post_ra>
// kernel: tpu_custom_call.1
= control target key start
LH: loop header
LB: loop body
LE: loop exit
PB: predicated region body
PF: predicated region fallthrough
CT: control target
= control target key end

     0   :  { %9 = vsyncpa [#allocation3], 0  ;;  %s459_s0 = inlined_call_operand.vmem [shape: bf16[8,4], index: 0, kind: input, shape index: {}]   ;;  %s460_s1 = inlined_call_operand.vmem [shape: bf16[4,128], index: 1, kind: input, shape index: {}]   ;;  %s461_s2 = inlined_call_operand.hbm [shape: bf16[2,128,128], index: 2, kind: input, shape index: {}]   ;;  %s462_s3 = inlined_call_operand.vmem [shape: f32[3,1,128], index: 3, kind: input, shape index: {}]   ;;  %s463_s4 = inlined_call_operand.hbm [shape: f32[8,128], index: 4, kind: output, shape index: {}]  }
   0x1   :  { %10 = vsyncpa [#allocation4], 0  ;;  %s19_s17 = sshll.u32 %s461_s2, 4  ;;  %s409_s18 = smov [#allocation2]   ;;  %s20_s17 = int_to_ptr.hbm [resolvable:$true] %s19_s17 }
   0x2   :  { %s21_s19 = sshll.u32 %s409_s18, 4  ;;  %s410_s20 = smov 64   ;;  %s22_s19 = int_to_ptr.vmem [resolvable:$true] %s21_s19 }
   0x3   :  { %s411_s21 = smov 4  }
   0x4   :  { %27 = dma.hbm_to_vmem [thread:$0]  %s20_s17, 2048, %s22_s19, [#allocation3], %s410_s20, %s410_s20, %s411_s21  }
   0x5   :  { %405 = dma.done.wait [#allocation3], 2048  }
   0x6   :  { %406 = vsyncadd [#allocation3], 4294965248  ;;  %vm45_vm0 = vcmask 1041408   ;;  %v36_v0 = vld [vmem:[%s460_s1] sm:$0x3]  ;;  %v337_v1 = vld [vmem:[#allocation2 + $0x38] sm:$0xff]  ;;  %v231_v31 = vlaneseq }
   0x7   :  { %v47_v2 = vsel %vm45_vm0, %v36_v0, 0  ;;  %v35_v3 = vld [vmem:[%s459_s0] sm:$0xf]  ;;  %vm41_vm1 = vcmask 31744   ;;  %133 = vmatpush.bf16.msra.mxu1 %v337_v1  ;;  %v336_v4 = vld [vmem:[#allocation2 + $0x30] sm:$0xff]  ;;  %v335_v5 = vld [vmem:[#allocation2 + $0x28] sm:$0xff] }
   0x8   :  { %56 = vmatpush.bf16.msra.mxu0 %v47_v2  ;;  %v334_v6 = vld [vmem:[#allocation2 + $0x20] sm:$0xff]  ;;  %v333_v7 = vld [vmem:[#allocation2 + $0x18] sm:$0xff]  ;;  %v332_v8 = vld [vmem:[#allocation2 + $0x10] sm:$0xff]  ;;  %v232_v32 = vand.u32 127, %v231_v31  ;;  %s412_s29 = smov [#allocation5]  }
   0x9   :  { %v331_v9 = vld [vmem:[#allocation2 + $0x8] sm:$0xff]  ;;  %v330_v10 = vld [vmem:[#allocation2] sm:$0xff]  ;;  %v345_v11 = vld [vmem:[#allocation2 + $0x78] sm:$0xff]  ;;  %s251_s30 = sshll.u32 %s412_s29, 4  ;;  %s252_s30 = int_to_ptr.vmem [resolvable:$true] %s251_s30 }
   0xa   :  { %218 = vmatpush.bf16.msra.mxu2 %v345_v11  ;;  %v344_v12 = vld [vmem:[#allocation2 + $0x70] sm:$0xff]  ;;  %v343_v13 = vld [vmem:[#allocation2 + $0x68] sm:$0xff]  ;;  %v342_v14 = vld [vmem:[#allocation2 + $0x60] sm:$0xff]  ;;  %vm233_vm2 = vcmp.lt.s32.totalorder %v232_v32, 2 }
   0xb   :  { %263 = vmatmul.msk.bf16.vlgmr.msra.gmra.mxu0 %vm41_vm1, %v35_v3  ;;  %134 = vmatpush.bf16.msra.mxu1 %v336_v4  ;;  %v341_v15 = vld [vmem:[#allocation2 + $0x58] sm:$0xff]  ;;  %v340_v16 = vld [vmem:[#allocation2 + $0x50] sm:$0xff]  ;;  %v350_v17 = vld [vmem:[%s462_s3] ss:$0 sm:$0xff] }
   0xc   :  { %v339_v23 = vld [vmem:[#allocation2 + $0x48] sm:$0xff]  ;;  %v338_v24 = vld [vmem:[#allocation2 + $0x40] sm:$0xff] }
   0xd   :  { %v351_v25 = vld [vmem:[%s462_s3 + $0x1] ss:$0 sm:$0xff]  ;;  %v352_v33 = vld [vmem:[%s462_s3 + $0x2] ss:$0 sm:$0xff]  ;;  %s253_s3 = sshll.u32 %s463_s4, 4  ;;  %s254_s3 = int_to_ptr.hbm [resolvable:$true] %s253_s3 }
   0xe   :  { %219 = vmatpush.bf16.msra.mxu2 %v344_v12 }
   0xf   :  { %135 = vmatpush.bf16.msra.mxu1 %v335_v5 }
  0x12   :  { %220 = vmatpush.bf16.msra.mxu2 %v343_v13 }
  0x13   :  { %136 = vmatpush.bf16.msra.mxu1 %v334_v6 }
  0x16   :  { %221 = vmatpush.bf16.msra.mxu2 %v342_v14 }
  0x17   :  { %137 = vmatpush.bf16.msra.mxu1 %v333_v7 }
  0x1a   :  { %222 = vmatpush.bf16.msra.mxu2 %v341_v15 }
  0x1b   :  { %138 = vmatpush.bf16.msra.mxu1 %v332_v8 }
  0x1e   :  { %223 = vmatpush.bf16.msra.mxu2 %v340_v16 }
  0x1f   :  { %139 = vmatpush.bf16.msra.mxu1 %v331_v9 }
  0x22   :  { %224 = vmatpush.bf16.msra.mxu2 %v339_v23 }
  0x23   :  { %140 = vmatpush.bf16.msra.mxu1 %v330_v10 }
  0x26   :  { %225 = vmatpush.bf16.msra.mxu2 %v338_v24 }
  0x88   :  { %v58_v18 = vpop.f32.mrf.mxu0 }
  0x89   :  { %v59_v19 = vadd.f32 %v350_v17, %v58_v18 }
  0x8b   :  { %v62_v20 = vmax.f32 %v59_v19, 0.0 }
  0x8d   :  { %v63_v21 = vpack.c.bf16 %v62_v20, %v62_v20 }
  0x8f   :  { %141 = vmatmul.bf16.vlgmr.msra.gmra.mxu1 %v63_v21 }
  0x90   :  { %v60_v22 = vpop.f32.mrf.mxu0 }
 0x10c   :  { %v142_v26 = vpop.f32.mrf.mxu1 }
 0x10d   :  { %v143_v27 = vadd.f32 %v351_v25, %v142_v26 }
 0x10f   :  { %v146_v28 = vmax.f32 %v143_v27, 0.0 }
 0x111   :  { %v147_v29 = vpack.c.bf16 %v146_v28, %v146_v28 }
 0x113   :  { %226 = vmatmul.bf16.vlgmr.msra.gmra.mxu2 %v147_v29 }
 0x114   :  { %v144_v30 = vpop.f32.mrf.mxu1 }
 0x196   :  { %v227_v34 = vpop.f32.mrf.mxu2 }
 0x197   :  { %v228_v35 = vadd.f32 %v352_v33, %v227_v34 }
 0x199   :  { %v234_v36 = vsel %vm233_vm2, %v228_v35, -inf }
 0x19a   :  { %235 = vmax.xlane.f32.xlu0 %v234_v36 }
 0x19e   :  { %v229_v37 = vpop.f32.mrf.mxu2 }
 0x20d   :  { %v236_v38 = vpop.xlane.xlu0 %235 }
 0x20e   :  { %v237_v39 = vsub.f32 %v234_v36, %v236_v38 }
 0x210   :  { %v238_v40 = vmul.f32 1.442695, %v237_v39 }
 0x212   :  { %353 = vpow2.f32 %v238_v40 }
 0x218   :  { %v354_v41 = vpop.eup %353 }
 0x219   :  { %240 = vadd.xlane.f32.xlu0 %v354_v41 }
 0x28c   :  { %v241_v42 = vpop.xlane.xlu0 %240 }
 0x28d   :  { %355 = vlog2.f32 %v241_v42 }
 0x293   :  { %v356_v43 = vpop.eup %355 }
 0x294   :  { %v243_v44 = vmul.f32 0.6931472, %v356_v43 }
 0x296   :  { %v244_v45 = vsub.f32 %v237_v39, %v243_v44 }
 0x298   :  { %245 = vst [vmem:[#allocation5] sm:$0xff] %v244_v45 }
 0x299   :  { %256 = dma.vmem_to_hbm [thread:$0]  %s252_s30, 128, %s254_s3, [#allocation4]  }
 0x29a   :  { %407 = dma.done.wait [#allocation4], 128  }
 0x29b   :  { %408 = vsyncadd [#allocation4], 4294967168 }
 0x29c   :  { %261 = vsyncpa [#allocation3], 1 }
 0x29d   :  { %262 = vsyncpa [#allocation4], 1 }

</bundles_post_ra>
